<compile_context>
chip_gen: v7x
topology: tpu7x:2x2x1
jax: 0.10.0
libtpu: 0.0.40
codegen_flags: <defaults>
</compile_context>

<pallas_src>
import functools

import jax
import jax.numpy as jnp
from jax.experimental import pallas as pl
from jax.experimental.pallas import tpu as pltpu


def _round_up(x, m):
    return ((x + m - 1) // m) * m


def _pad_gate_cols(w, hidden, hidden_pad):
    """(..., 4*H) -> (..., 4*H_pad): zero-pad each of the 4 gate blocks."""
    lead = w.shape[:-1]
    w4 = w.reshape(lead + (4, hidden))
    w4 = jnp.pad(w4, [(0, 0)] * len(lead) + [(0, 0), (0, hidden_pad - hidden)])
    return w4.reshape(lead + (4 * hidden_pad,))


def lstm_chunk_kernel(len_ref, pg_ref, w_hh_ref, hn_ref,
                      h_scr, c_scr, *, chunk, hidden_pad):
    """One grid step == one (batch_block, time_chunk) tile of the recurrence."""
    t_blk = pl.program_id(1)

    # New batch block (time index restarts) -> reset carried state.
    @pl.when(t_blk == 0)
    def _():
        h_scr[...] = jnp.zeros_like(h_scr)
        c_scr[...] = jnp.zeros_like(c_scr)

    lengths = len_ref[...]              # (TB, 1) int32, loaded once per block
    w_hh = w_hh_ref[...]                # (H_pad, 4*H_pad) bf16
    t0 = t_blk * chunk
    H = hidden_pad

    def step(tt, carry):
        h, c = carry                    # (TB, H_pad) f32
        # Pre-gates (x @ W_ih + b) were hoisted to the wrapper (bf16 slab);
        # only the recurrent matmul remains on the critical path.
        # PyTorch gate order [i, f, g, o].
        gates = (pg_ref[tt].astype(jnp.float32)
                 + jnp.dot(h.astype(jnp.bfloat16), w_hh,
                           preferred_element_type=jnp.float32))
        i_g = jax.nn.sigmoid(gates[:, 0 * H:1 * H])
        f_g = jax.nn.sigmoid(gates[:, 1 * H:2 * H])
        g_g = jnp.tanh(gates[:, 2 * H:3 * H])
        o_g = jax.nn.sigmoid(gates[:, 3 * H:4 * H])
        c_new = f_g * c + i_g * g_g
        h_new = o_g * jnp.tanh(c_new)
        # mask computed in-kernel: freeze state past each sequence's end
        live = (t0 + tt) < lengths      # (TB, 1) bool, broadcasts over H
        return jnp.where(live, h_new, h), jnp.where(live, c_new, c)

    h, c = jax.lax.fori_loop(0, chunk, step, (h_scr[...], c_scr[...]),
                             unroll=min(8, chunk))
    h_scr[...] = h
    c_scr[...] = c

    # method == 'mean' path: rep = hn -> emit final hidden state (lane-dense),
    # writing the loop carry directly (no redundant h_scr reload).
    @pl.when(t_blk == pl.num_programs(1) - 1)
    def _():
        hn_ref[...] = h


def base_lstm_forward(x_ids, lengths, params, *, time_chunk=16,
                      batch_block=None):
    """x_ids: (B, T) int32 token ids, lengths: (B,) int32."""
    emb_table, w_ih, w_hh, b, w_out, b_out = params
    B, T = x_ids.shape
    D = emb_table.shape[1]
    H = w_hh.shape[0]
    assert T >= 1

    # batch_block: sublane aligned, capped at 128 so (a) the recurrent matmul
    # fills the MXU M dimension at large B and (b) n_b >= 2 when B permits
    # (both v7x TensorCores get work via the "parallel" batch axis).
    if batch_block is None:
        batch_block = max(8, min(128, _round_up(B, 8)))
    assert batch_block % 8 == 0

    H_pad = _round_up(H, 128)           # gate slices land on lane boundaries
    B_pad = _round_up(B, batch_block)   # full sublane tiles
    T_pad = _round_up(T, time_chunk)
    n_b = B_pad // batch_block
    n_t = T_pad // time_chunk

    # ---------------- XLA glue (deliberately outside the kernel) -------------
    ids = jnp.pad(x_ids, ((0, B_pad - B), (0, T_pad - T)))
    len_col = jnp.pad(lengths.astype(jnp.int32), (0, B_pad - B))[:, None]

    w_ih_p = _pad_gate_cols(w_ih, H, H_pad).astype(jnp.bfloat16)     # (D, 4H_pad)
    w_hh_p = _pad_gate_cols(w_hh, H, H_pad)
    w_hh_p = jnp.pad(w_hh_p, ((0, H_pad - H), (0, 0))).astype(jnp.bfloat16)
    b_p = _pad_gate_cols(b, H, H_pad).astype(jnp.float32)            # (1, 4H_pad)

    # Embedding gather in bf16 and time-major order, then ONE large bf16 input
    # projection with the bias folded into its epilogue.  Pre-gates stored as
    # bf16 and laid out (n_b, T_pad, batch_block, 4*H_pad) so each kernel
    # block is one contiguous DMA region.
    emb_bf16 = emb_table.astype(jnp.bfloat16)
    emb_tm = jnp.take(emb_bf16, ids.T, axis=0)                        # (T_pad,B_pad,D)
    pre_gates = (jnp.dot(emb_tm.reshape(T_pad * B_pad, D), w_ih_p,
                         preferred_element_type=jnp.float32)
                 + b_p).astype(jnp.bfloat16)
    pre_gates = pre_gates.reshape(T_pad, n_b, batch_block, 4 * H_pad)
    pre_gates = jnp.transpose(pre_gates, (1, 0, 2, 3))                # (n_b,T_pad,TB,4H_pad)

    # ---------------- VMEM budget -> explicit scoped limit -------------------
    pg_block_bytes = time_chunk * batch_block * 4 * H_pad * 2         # bf16
    w_hh_bytes = H_pad * 4 * H_pad * 2                                # bf16, single-buffered
    len_bytes = batch_block * 128 * 4                                 # int32, lane-padded
    out_bytes = batch_block * H_pad * 4                               # f32
    scr_bytes = 2 * batch_block * H_pad * 4                           # h, c scratch
    budget = (2 * pg_block_bytes + w_hh_bytes + 2 * len_bytes
              + 2 * out_bytes + scr_bytes)
    vmem_limit = int(min(max(2 * budget, 32 << 20), 64 << 20))        # <= v7x physical

    # ---------------- Pallas recurrence kernel -------------------------------
    kernel = functools.partial(lstm_chunk_kernel,
                               chunk=time_chunk, hidden_pad=H_pad)

    hn_pad = pl.pallas_call(
        kernel,
        out_shape=jax.ShapeDtypeStruct((B_pad, H_pad), jnp.float32),
        grid_spec=pltpu.PrefetchScalarGridSpec(
            num_scalar_prefetch=0,
            grid=(n_b, n_t),
            in_specs=[
                # per-batch-block sequence lengths (loaded once per block)
                pl.BlockSpec((batch_block, 1), lambda bb, tb: (bb, 0)),
                # bf16 pre-gate slab for this (batch, time) tile: one
                # contiguous region, double-buffered (sweep Buffered(3) if the
                # slab DMA is exposed at small H and VMEM headroom allows).
                pl.BlockSpec((pl.Squeezed(), time_chunk, batch_block, 4 * H_pad),
                             lambda bb, tb: (bb, tb, 0, 0)),
                # constant recurrent weights: single-buffered
                pl.BlockSpec((H_pad, 4 * H_pad), lambda bb, tb: (0, 0),
                             pipeline_mode=pl.Buffered(1)),
            ],
            out_specs=pl.BlockSpec((batch_block, H_pad), lambda bb, tb: (bb, 0)),
            scratch_shapes=[pltpu.VMEM((batch_block, H_pad), jnp.float32),   # h
                            pltpu.VMEM((batch_block, H_pad), jnp.float32)],  # c
        ),
        compiler_params=pltpu.CompilerParams(
            dimension_semantics=("parallel", "arbitrary"),
            vmem_limit_bytes=vmem_limit),
    )(len_col, pre_gates, w_hh_p)

    # Final linear kept in the wrapper: hn is lane-dense (B_pad, H_pad); an
    # in-kernel OUT=2 output would force masked sub-128-lane stores.
    hn = hn_pad[:B, :H]
    return hn @ w_out + b_out


def reference_forward(x_ids, lengths, params):
    """Pure-JAX f32 reference (masked LSTM + linear, PyTorch semantics)."""
    emb_table, w_ih, w_hh, b, w_out, b_out = params
    emb_tm = jnp.transpose(jnp.take(emb_table, x_ids, axis=0), (1, 0, 2))
    T, B, _ = emb_tm.shape
    H = w_hh.shape[0]
    mask = (jnp.arange(T)[:, None] < lengths[None, :]).astype(jnp.float32)
    mask = mask[..., None]                            # (T, B, 1)

    def step(carry, inp):
        h, c = carry
        x, m = inp
        gates = x @ w_ih + h @ w_hh + b
        i_g, f_g, g_g, o_g = jnp.split(gates, 4, axis=-1)
        i_g = jax.nn.sigmoid(i_g)
        f_g = jax.nn.sigmoid(f_g)
        g_g = jnp.tanh(g_g)
        o_g = jax.nn.sigmoid(o_g)
        c_new = f_g * c + i_g * g_g
        h_new = o_g * jnp.tanh(c_new)
        h = jnp.where(m > 0, h_new, h)
        c = jnp.where(m > 0, c_new, c)
        return (h, c), None

    init = (jnp.zeros((B, H), jnp.float32), jnp.zeros((B, H), jnp.float32))
    (hn, _), _ = jax.lax.scan(step, init, (emb_tm, mask))
    return hn @ w_out + b_out


def make_params(key, vocab, dim, hidden, output_size):
    """Deterministic synthetic parameters (PyTorch-style uniform init)."""
    ks = jax.random.split(key, 6)
    emb_table = jax.random.normal(ks[0], (vocab, dim), jnp.float32)
    s = 1.0 / jnp.sqrt(hidden)
    # stored pre-transposed relative to torch: (in, 4H) so we compute x @ W
    w_ih = jax.random.uniform(ks[1], (dim, 4 * hidden), jnp.float32, -s, s)
    w_hh = jax.random.uniform(ks[2], (hidden, 4 * hidden), jnp.float32, -s, s)
    b = jax.random.uniform(ks[3], (1, 4 * hidden), jnp.float32, -s, s)  # b_ih+b_hh
    so = 1.0 / jnp.sqrt(hidden)
    w_out = jax.random.uniform(ks[4], (hidden, output_size), jnp.float32, -so, so)
    b_out = jax.random.uniform(ks[5], (1, output_size), jnp.float32, -so, so)
    return emb_table, w_ih, w_hh, b, w_out, b_out


if __name__ == "__main__":
    VOCAB, DIM, HIDDEN, OUT = 50, 16, 32, 2
    B, T = 4, 10

    key = jax.random.PRNGKey(0)
    k_par, k_ids = jax.random.split(key)
    params = make_params(k_par, VOCAB, DIM, HIDDEN, OUT)

    x_ids = jax.random.randint(k_ids, (B, T), 0, VOCAB, dtype=jnp.int32)
    lengths = jnp.array([10, 5, 3, 7], dtype=jnp.int32)

    ref = jax.block_until_ready(reference_forward(x_ids, lengths, params))

    # Multi-chunk path (T padded 10 -> 12, 3 time chunks of 4).
    out = jax.block_until_ready(
        base_lstm_forward(x_ids, lengths, params, time_chunk=4))
    assert out.shape == (B, OUT)
    # bf16 MXU inputs / bf16 pre-gate slab -> tolerance looser than pure f32.
    # TODO(synk): validate tolerance at production T/H before locking in bf16.
    assert bool(jnp.allclose(out, ref, atol=5e-2, rtol=5e-2)), (out, ref)

    # Default chunking path (T padded 10 -> 16, single time chunk of 16).
    out2 = jax.block_until_ready(
        base_lstm_forward(x_ids, lengths, params))
    assert bool(jnp.allclose(out2, ref, atol=5e-2, rtol=5e-2)), (out2, ref)

    print("KERNEL_OK")
</pallas_src>

<mosaic_0001>
module attributes {stable_mosaic.version = 11 : i64} {
  func.func @lstm_chunk_kernel(%arg0: i32, %arg1: i32, %arg2: memref<8x1xi32, #tpu.memory_space<vmem>>, %arg3: memref<1x4x8x512xbf16, #tpu.memory_space<vmem>>, %arg4: memref<128x512xbf16, #tpu.memory_space<vmem>>, %arg5: memref<8x128xf32, #tpu.memory_space<vmem>>, %arg6: memref<8x128xf32, #tpu.memory_space<vmem>>, %arg7: memref<8x128xf32, #tpu.memory_space<vmem>>) attributes {dimension_semantics = [#tpu.dimension_semantics<parallel>, #tpu.dimension_semantics<arbitrary>], iteration_bounds = array<i64: 1, 3>, scalar_prefetch = 0 : i64, scratch_operands = 2 : i64, tpu.core_type = #tpu.core_type<tc>, window_params = [{transform_indices = @transform_0, window_bounds = array<i64: 8, 1>}, {transform_indices = @transform_1, window_bounds = array<i64: 1, 4, 8, 512>}, {pipeline_mode = #tpu.pipeline_mode<synchronous>, transform_indices = @transform_2, window_bounds = array<i64: 128, 512>}, {transform_indices = @transform_3, window_bounds = array<i64: 8, 128>}]} {
    %c0_i32 = arith.constant 0 : i32
    %0 = arith.cmpi eq, %arg1, %c0_i32 : i32
    %1 = arith.extui %0 : i1 to i32
    %c0_i32_0 = arith.constant 0 : i32
    %2 = arith.cmpi ne, %1, %c0_i32_0 : i32
    scf.if %2 {
      %cst_43 = arith.constant 0.000000e+00 : f32
      %177 = vector.broadcast %cst_43 : f32 to vector<8x128xf32>
      %c0_44 = arith.constant 0 : index
      %c0_45 = arith.constant 0 : index
      %178 = vector.load %arg6[%c0_44, %c0_45] : memref<8x128xf32, #tpu.memory_space<vmem>>, vector<8x128xf32>
      tpu.vector_store %arg6[%c0_44, %c0_45], %177 {strides = array<i32>} : memref<8x128xf32, #tpu.memory_space<vmem>>, vector<8x128xf32>,
      %cst_46 = arith.constant 0.000000e+00 : f32
      %179 = vector.broadcast %cst_46 : f32 to vector<8x128xf32>
      %c0_47 = arith.constant 0 : index
      %c0_48 = arith.constant 0 : index
      %180 = vector.load %arg7[%c0_47, %c0_48] : memref<8x128xf32, #tpu.memory_space<vmem>>, vector<8x128xf32>
      tpu.vector_store %arg7[%c0_47, %c0_48], %179 {strides = array<i32>} : memref<8x128xf32, #tpu.memory_space<vmem>>, vector<8x128xf32>,
    } else {
    }
    %c0 = arith.constant 0 : index
    %c0_1 = arith.constant 0 : index
    %3 = vector.load %arg2[%c0, %c0_1] : memref<8x1xi32, #tpu.memory_space<vmem>>, vector<8x1xi32>
    %c0_2 = arith.constant 0 : index
    %c0_3 = arith.constant 0 : index
    %4 = vector.load %arg4[%c0_2, %c0_3] : memref<128x512xbf16, #tpu.memory_space<vmem>>, vector<128x512xbf16>
    %c4_i32 = arith.constant 4 : i32
    %5 = arith.muli %arg1, %c4_i32 : i32
    %c0_4 = arith.constant 0 : index
    %c0_5 = arith.constant 0 : index
    %6 = vector.load %arg6[%c0_4, %c0_5] : memref<8x128xf32, #tpu.memory_space<vmem>>, vector<8x128xf32>
    %c0_6 = arith.constant 0 : index
    %c0_7 = arith.constant 0 : index
    %7 = vector.load %arg7[%c0_6, %c0_7] : memref<8x128xf32, #tpu.memory_space<vmem>>, vector<8x128xf32>
    %c0_i32_8 = arith.constant 0 : i32
    %c0_9 = arith.constant 0 : index
    %8 = arith.index_cast %c0_i32_8 : i32 to index
    %c0_10 = arith.constant 0 : index
    %c0_11 = arith.constant 0 : index
    %9 = vector.load %arg3[%c0_9, %8, %c0_10, %c0_11] : memref<1x4x8x512xbf16, #tpu.memory_space<vmem>>, vector<1x1x8x512xbf16>
    %10 = vector.shape_cast %9 : vector<1x1x8x512xbf16> to vector<8x512xbf16>
    %11 = arith.extf %10 : vector<8x512xbf16> to vector<8x512xf32>
    %12 = arith.truncf %6 : vector<8x128xf32> to vector<8x128xbf16>
    %cst = arith.constant dense<0.000000e+00> : vector<8x512xf32>
    %13 = tpu.matmul %12, %4, %cst {dimension_numbers = #tpu.dot_dimension_numbers<[1], [0], [0], [1], [0, 0, 1, 1], [], []>} : vector<8x128xbf16>, vector<128x512xbf16>, vector<8x512xf32> -> vector<8x512xf32>
    %14 = arith.addf %11, %13 : vector<8x512xf32>
    %15 = vector.extract_strided_slice %14 {offsets = [0, 0], sizes = [8, 128], strides = [1, 1]} : vector<8x512xf32> to vector<8x128xf32>
    %16 = arith.negf %15 : vector<8x128xf32>
    %17 = math.exp %16 : vector<8x128xf32>
    %cst_12 = arith.constant 1.000000e+00 : f32
    %18 = vector.broadcast %cst_12 : f32 to vector<8x128xf32>
    %19 = arith.addf %18, %17 : vector<8x128xf32>
    %20 = arith.divf %18, %19 : vector<8x128xf32>
    %21 = vector.extract_strided_slice %14 {offsets = [0, 128], sizes = [8, 128], strides = [1, 1]} : vector<8x512xf32> to vector<8x128xf32>
    %22 = arith.negf %21 : vector<8x128xf32>
    %23 = math.exp %22 : vector<8x128xf32>
    %cst_13 = arith.constant 1.000000e+00 : f32
    %24 = vector.broadcast %cst_13 : f32 to vector<8x128xf32>
    %25 = arith.addf %24, %23 : vector<8x128xf32>
    %26 = arith.divf %24, %25 : vector<8x128xf32>
    %27 = vector.extract_strided_slice %14 {offsets = [0, 256], sizes = [8, 128], strides = [1, 1]} : vector<8x512xf32> to vector<8x128xf32>
    %28 = math.tanh %27 : vector<8x128xf32>
    %29 = vector.extract_strided_slice %14 {offsets = [0, 384], sizes = [8, 128], strides = [1, 1]} : vector<8x512xf32> to vector<8x128xf32>
    %30 = arith.negf %29 : vector<8x128xf32>
    %31 = math.exp %30 : vector<8x128xf32>
    %cst_14 = arith.constant 1.000000e+00 : f32
    %32 = vector.broadcast %cst_14 : f32 to vector<8x128xf32>
    %33 = arith.addf %32, %31 : vector<8x128xf32>
    %34 = arith.divf %32, %33 : vector<8x128xf32>
    %35 = arith.mulf %26, %7 : vector<8x128xf32>
    %36 = arith.mulf %20, %28 : vector<8x128xf32>
    %37 = arith.addf %35, %36 : vector<8x128xf32>
    %38 = math.tanh %37 : vector<8x128xf32>
    %39 = arith.mulf %34, %38 : vector<8x128xf32>
    %40 = arith.addi %5, %c0_i32_8 : i32
    %41 = vector.broadcast %40 : i32 to vector<8x1xi32>
    %42 = arith.cmpi slt, %41, %3 : vector<8x1xi32>
    %43 = vector.shape_cast %42 : vector<8x1xi1> to vector<8x1xi1>
    %44 = vector.broadcast %43 : vector<8x1xi1> to vector<8x128xi1>
    %45 = arith.select %44, %39, %6 : vector<8x128xi1>, vector<8x128xf32>
    %46 = vector.shape_cast %42 : vector<8x1xi1> to vector<8x1xi1>
    %47 = vector.broadcast %46 : vector<8x1xi1> to vector<8x128xi1>
    %48 = arith.select %47, %37, %7 : vector<8x128xi1>, vector<8x128xf32>
    %c1_i32 = arith.constant 1 : i32
    %c0_15 = arith.constant 0 : index
    %49 = arith.index_cast %c1_i32 : i32 to index
    %c0_16 = arith.constant 0 : index
    %c0_17 = arith.constant 0 : index
    %50 = vector.load %arg3[%c0_15, %49, %c0_16, %c0_17] : memref<1x4x8x512xbf16, #tpu.memory_space<vmem>>, vector<1x1x8x512xbf16>
    %51 = vector.shape_cast %50 : vector<1x1x8x512xbf16> to vector<8x512xbf16>
    %52 = arith.extf %51 : vector<8x512xbf16> to vector<8x512xf32>
    %53 = arith.truncf %45 : vector<8x128xf32> to vector<8x128xbf16>
    %cst_18 = arith.constant dense<0.000000e+00> : vector<8x512xf32>
    %54 = tpu.matmul %53, %4, %cst_18 {dimension_numbers = #tpu.dot_dimension_numbers<[1], [0], [0], [1], [0, 0, 1, 1], [], []>} : vector<8x128xbf16>, vector<128x512xbf16>, vector<8x512xf32> -> vector<8x512xf32>
    %55 = arith.addf %52, %54 : vector<8x512xf32>
    %56 = vector.extract_strided_slice %55 {offsets = [0, 0], sizes = [8, 128], strides = [1, 1]} : vector<8x512xf32> to vector<8x128xf32>
    %57 = arith.negf %56 : vector<8x128xf32>
    %58 = math.exp %57 : vector<8x128xf32>
    %cst_19 = arith.constant 1.000000e+00 : f32
    %59 = vector.broadcast %cst_19 : f32 to vector<8x128xf32>
    %60 = arith.addf %59, %58 : vector<8x128xf32>
    %61 = arith.divf %59, %60 : vector<8x128xf32>
    %62 = vector.extract_strided_slice %55 {offsets = [0, 128], sizes = [8, 128], strides = [1, 1]} : vector<8x512xf32> to vector<8x128xf32>
    %63 = arith.negf %62 : vector<8x128xf32>
    %64 = math.exp %63 : vector<8x128xf32>
    %cst_20 = arith.constant 1.000000e+00 : f32
    %65 = vector.broadcast %cst_20 : f32 to vector<8x128xf32>
    %66 = arith.addf %65, %64 : vector<8x128xf32>
    %67 = arith.divf %65, %66 : vector<8x128xf32>
    %68 = vector.extract_strided_slice %55 {offsets = [0, 256], sizes = [8, 128], strides = [1, 1]} : vector<8x512xf32> to vector<8x128xf32>
    %69 = math.tanh %68 : vector<8x128xf32>
    %70 = vector.extract_strided_slice %55 {offsets = [0, 384], sizes = [8, 128], strides = [1, 1]} : vector<8x512xf32> to vector<8x128xf32>
    %71 = arith.negf %70 : vector<8x128xf32>
    %72 = math.exp %71 : vector<8x128xf32>
    %cst_21 = arith.constant 1.000000e+00 : f32
    %73 = vector.broadcast %cst_21 : f32 to vector<8x128xf32>
    %74 = arith.addf %73, %72 : vector<8x128xf32>
    %75 = arith.divf %73, %74 : vector<8x128xf32>
    %76 = arith.mulf %67, %48 : vector<8x128xf32>
    %77 = arith.mulf %61, %69 : vector<8x128xf32>
    %78 = arith.addf %76, %77 : vector<8x128xf32>
    %79 = math.tanh %78 : vector<8x128xf32>
    %80 = arith.mulf %75, %79 : vector<8x128xf32>
    %81 = arith.addi %5, %c1_i32 : i32
    %82 = vector.broadcast %81 : i32 to vector<8x1xi32>
    %83 = arith.cmpi slt, %82, %3 : vector<8x1xi32>
    %84 = vector.shape_cast %83 : vector<8x1xi1> to vector<8x1xi1>
    %85 = vector.broadcast %84 : vector<8x1xi1> to vector<8x128xi1>
    %86 = arith.select %85, %80, %45 : vector<8x128xi1>, vector<8x128xf32>
    %87 = vector.shape_cast %83 : vector<8x1xi1> to vector<8x1xi1>
    %88 = vector.broadcast %87 : vector<8x1xi1> to vector<8x128xi1>
    %89 = arith.select %88, %78, %48 : vector<8x128xi1>, vector<8x128xf32>
    %c2_i32 = arith.constant 2 : i32
    %c0_22 = arith.constant 0 : index
    %90 = arith.index_cast %c2_i32 : i32 to index
    %c0_23 = arith.constant 0 : index
    %c0_24 = arith.constant 0 : index
    %91 = vector.load %arg3[%c0_22, %90, %c0_23, %c0_24] : memref<1x4x8x512xbf16, #tpu.memory_space<vmem>>, vector<1x1x8x512xbf16>
    %92 = vector.shape_cast %91 : vector<1x1x8x512xbf16> to vector<8x512xbf16>
    %93 = arith.extf %92 : vector<8x512xbf16> to vector<8x512xf32>
    %94 = arith.truncf %86 : vector<8x128xf32> to vector<8x128xbf16>
    %cst_25 = arith.constant dense<0.000000e+00> : vector<8x512xf32>
    %95 = tpu.matmul %94, %4, %cst_25 {dimension_numbers = #tpu.dot_dimension_numbers<[1], [0], [0], [1], [0, 0, 1, 1], [], []>} : vector<8x128xbf16>, vector<128x512xbf16>, vector<8x512xf32> -> vector<8x512xf32>
    %96 = arith.addf %93, %95 : vector<8x512xf32>
    %97 = vector.extract_strided_slice %96 {offsets = [0, 0], sizes = [8, 128], strides = [1, 1]} : vector<8x512xf32> to vector<8x128xf32>
    %98 = arith.negf %97 : vector<8x128xf32>
    %99 = math.exp %98 : vector<8x128xf32>
    %cst_26 = arith.constant 1.000000e+00 : f32
    %100 = vector.broadcast %cst_26 : f32 to vector<8x128xf32>
    %101 = arith.addf %100, %99 : vector<8x128xf32>
    %102 = arith.divf %100, %101 : vector<8x128xf32>
    %103 = vector.extract_strided_slice %96 {offsets = [0, 128], sizes = [8, 128], strides = [1, 1]} : vector<8x512xf32> to vector<8x128xf32>
    %104 = arith.negf %103 : vector<8x128xf32>
    %105 = math.exp %104 : vector<8x128xf32>
    %cst_27 = arith.constant 1.000000e+00 : f32
    %106 = vector.broadcast %cst_27 : f32 to vector<8x128xf32>
    %107 = arith.addf %106, %105 : vector<8x128xf32>
    %108 = arith.divf %106, %107 : vector<8x128xf32>
    %109 = vector.extract_strided_slice %96 {offsets = [0, 256], sizes = [8, 128], strides = [1, 1]} : vector<8x512xf32> to vector<8x128xf32>
    %110 = math.tanh %109 : vector<8x128xf32>
    %111 = vector.extract_strided_slice %96 {offsets = [0, 384], sizes = [8, 128], strides = [1, 1]} : vector<8x512xf32> to vector<8x128xf32>
    %112 = arith.negf %111 : vector<8x128xf32>
    %113 = math.exp %112 : vector<8x128xf32>
    %cst_28 = arith.constant 1.000000e+00 : f32
    %114 = vector.broadcast %cst_28 : f32 to vector<8x128xf32>
    %115 = arith.addf %114, %113 : vector<8x128xf32>
    %116 = arith.divf %114, %115 : vector<8x128xf32>
    %117 = arith.mulf %108, %89 : vector<8x128xf32>
    %118 = arith.mulf %102, %110 : vector<8x128xf32>
    %119 = arith.addf %117, %118 : vector<8x128xf32>
    %120 = math.tanh %119 : vector<8x128xf32>
    %121 = arith.mulf %116, %120 : vector<8x128xf32>
    %122 = arith.addi %5, %c2_i32 : i32
    %123 = vector.broadcast %122 : i32 to vector<8x1xi32>
    %124 = arith.cmpi slt, %123, %3 : vector<8x1xi32>
    %125 = vector.shape_cast %124 : vector<8x1xi1> to vector<8x1xi1>
    %126 = vector.broadcast %125 : vector<8x1xi1> to vector<8x128xi1>
    %127 = arith.select %126, %121, %86 : vector<8x128xi1>, vector<8x128xf32>
    %128 = vector.shape_cast %124 : vector<8x1xi1> to vector<8x1xi1>
    %129 = vector.broadcast %128 : vector<8x1xi1> to vector<8x128xi1>
    %130 = arith.select %129, %119, %89 : vector<8x128xi1>, vector<8x128xf32>
    %c3_i32 = arith.constant 3 : i32
    %c0_29 = arith.constant 0 : index
    %131 = arith.index_cast %c3_i32 : i32 to index
    %c0_30 = arith.constant 0 : index
    %c0_31 = arith.constant 0 : index
    %132 = vector.load %arg3[%c0_29, %131, %c0_30, %c0_31] : memref<1x4x8x512xbf16, #tpu.memory_space<vmem>>, vector<1x1x8x512xbf16>
    %133 = vector.shape_cast %132 : vector<1x1x8x512xbf16> to vector<8x512xbf16>
    %134 = arith.extf %133 : vector<8x512xbf16> to vector<8x512xf32>
    %135 = arith.truncf %127 : vector<8x128xf32> to vector<8x128xbf16>
    %cst_32 = arith.constant dense<0.000000e+00> : vector<8x512xf32>
    %136 = tpu.matmul %135, %4, %cst_32 {dimension_numbers = #tpu.dot_dimension_numbers<[1], [0], [0], [1], [0, 0, 1, 1], [], []>} : vector<8x128xbf16>, vector<128x512xbf16>, vector<8x512xf32> -> vector<8x512xf32>
    %137 = arith.addf %134, %136 : vector<8x512xf32>
    %138 = vector.extract_strided_slice %137 {offsets = [0, 0], sizes = [8, 128], strides = [1, 1]} : vector<8x512xf32> to vector<8x128xf32>
    %139 = arith.negf %138 : vector<8x128xf32>
    %140 = math.exp %139 : vector<8x128xf32>
    %cst_33 = arith.constant 1.000000e+00 : f32
    %141 = vector.broadcast %cst_33 : f32 to vector<8x128xf32>
    %142 = arith.addf %141, %140 : vector<8x128xf32>
    %143 = arith.divf %141, %142 : vector<8x128xf32>
    %144 = vector.extract_strided_slice %137 {offsets = [0, 128], sizes = [8, 128], strides = [1, 1]} : vector<8x512xf32> to vector<8x128xf32>
    %145 = arith.negf %144 : vector<8x128xf32>
    %146 = math.exp %145 : vector<8x128xf32>
    %cst_34 = arith.constant 1.000000e+00 : f32
    %147 = vector.broadcast %cst_34 : f32 to vector<8x128xf32>
    %148 = arith.addf %147, %146 : vector<8x128xf32>
    %149 = arith.divf %147, %148 : vector<8x128xf32>
    %150 = vector.extract_strided_slice %137 {offsets = [0, 256], sizes = [8, 128], strides = [1, 1]} : vector<8x512xf32> to vector<8x128xf32>
    %151 = math.tanh %150 : vector<8x128xf32>
    %152 = vector.extract_strided_slice %137 {offsets = [0, 384], sizes = [8, 128], strides = [1, 1]} : vector<8x512xf32> to vector<8x128xf32>
    %153 = arith.negf %152 : vector<8x128xf32>
    %154 = math.exp %153 : vector<8x128xf32>
    %cst_35 = arith.constant 1.000000e+00 : f32
    %155 = vector.broadcast %cst_35 : f32 to vector<8x128xf32>
    %156 = arith.addf %155, %154 : vector<8x128xf32>
    %157 = arith.divf %155, %156 : vector<8x128xf32>
    %158 = arith.mulf %149, %130 : vector<8x128xf32>
    %159 = arith.mulf %143, %151 : vector<8x128xf32>
    %160 = arith.addf %158, %159 : vector<8x128xf32>
    %161 = math.tanh %160 : vector<8x128xf32>
    %162 = arith.mulf %157, %161 : vector<8x128xf32>
    %163 = arith.addi %5, %c3_i32 : i32
    %164 = vector.broadcast %163 : i32 to vector<8x1xi32>
    %165 = arith.cmpi slt, %164, %3 : vector<8x1xi32>
    %166 = vector.shape_cast %165 : vector<8x1xi1> to vector<8x1xi1>
    %167 = vector.broadcast %166 : vector<8x1xi1> to vector<8x128xi1>
    %168 = arith.select %167, %162, %127 : vector<8x128xi1>, vector<8x128xf32>
    %169 = vector.shape_cast %165 : vector<8x1xi1> to vector<8x1xi1>
    %170 = vector.broadcast %169 : vector<8x1xi1> to vector<8x128xi1>
    %171 = arith.select %170, %160, %130 : vector<8x128xi1>, vector<8x128xf32>
    %c4_i32_36 = arith.constant 4 : i32
    %c0_37 = arith.constant 0 : index
    %c0_38 = arith.constant 0 : index
    %172 = vector.load %arg6[%c0_37, %c0_38] : memref<8x128xf32, #tpu.memory_space<vmem>>, vector<8x128xf32>
    tpu.vector_store %arg6[%c0_37, %c0_38], %168 {strides = array<i32>} : memref<8x128xf32, #tpu.memory_space<vmem>>, vector<8x128xf32>,
    %c0_39 = arith.constant 0 : index
    %c0_40 = arith.constant 0 : index
    %173 = vector.load %arg7[%c0_39, %c0_40] : memref<8x128xf32, #tpu.memory_space<vmem>>, vector<8x128xf32>
    tpu.vector_store %arg7[%c0_39, %c0_40], %171 {strides = array<i32>} : memref<8x128xf32, #tpu.memory_space<vmem>>, vector<8x128xf32>,
    %c2_i32_41 = arith.constant 2 : i32
    %174 = arith.cmpi eq, %arg1, %c2_i32_41 : i32
    %175 = arith.extui %174 : i1 to i32
    %c0_i32_42 = arith.constant 0 : i32
    %176 = arith.cmpi ne, %175, %c0_i32_42 : i32
    scf.if %176 {
      %c0_43 = arith.constant 0 : index
      %c0_44 = arith.constant 0 : index
      %177 = vector.load %arg5[%c0_43, %c0_44] : memref<8x128xf32, #tpu.memory_space<vmem>>, vector<8x128xf32>
      tpu.vector_store %arg5[%c0_43, %c0_44], %168 {strides = array<i32>} : memref<8x128xf32, #tpu.memory_space<vmem>>, vector<8x128xf32>,
    } else {
    }
    return
  }
  func.func @transform_0(%arg0: i32, %arg1: i32) -> (i32, i32) {
    %c0_i32 = arith.constant 0 : i32
    %c0_i32_0 = arith.constant 0 : i32
    return %arg0, %c0_i32 : i32, i32
  }
  func.func @transform_1(%arg0: i32, %arg1: i32) -> (i32, i32, i32, i32) {
    %c0_i32 = arith.constant 0 : i32
    %c0_i32_0 = arith.constant 0 : i32
    %c0_i32_1 = arith.constant 0 : i32
    return %arg0, %arg1, %c0_i32, %c0_i32_0 : i32, i32, i32, i32
  }
  func.func @transform_2(%arg0: i32, %arg1: i32) -> (i32, i32) {
    %c0_i32 = arith.constant 0 : i32
    %c0_i32_0 = arith.constant 0 : i32
    %c0_i32_1 = arith.constant 0 : i32
    return %c0_i32, %c0_i32_0 : i32, i32
  }
  func.func @transform_3(%arg0: i32, %arg1: i32) -> (i32, i32) {
    %c0_i32 = arith.constant 0 : i32
    %c0_i32_0 = arith.constant 0 : i32
    return %arg0, %c0_i32 : i32, i32
  }
}

</mosaic_0001>

<bundles_post_ra>
// kernel: tpu_custom_call.1
= control target key start
LH: loop header
LB: loop body
LE: loop exit
PB: predicated region body
PF: predicated region fallthrough
CT: control target
= control target key end

     0   :  { %8 = vsyncpa [#allocation5], 0  ;;  %s1929_s0 = inlined_call_operand.vmem [shape: s32[8,1], index: 0, kind: input, shape index: {}]   ;;  %s1930_s1 = inlined_call_operand.hbm [shape: bf16[1,12,8,512], index: 1, kind: input, shape index: {}]   ;;  %s1931_s2 = inlined_call_operand.hbm [shape: bf16[128,512], index: 2, kind: input, shape index: {}]   ;;  %s1932_s3 = inlined_call_operand.hbm [shape: f32[8,128], index: 3, kind: output, shape index: {}]  }
   0x1   :  { %10 = vsyncpa [#allocation5 + $0x1], 0 }
   0x2   :  { %11 = vsyncpa [#allocation8], 0 }
   0x3   :  { %12 = vsyncpa [#allocation6], 0  ;;  %s1483_s12 = smov 0   ;;  %s1485_s13 = smov 0  }
   0x4   :  { %s1487_s14 = smov 0   ;;  %s1489_s15 = smov 0  }
   0x5   :  { %s1491_s16 = smov 0   ;;  %s1493_s17 = smov 0  }
   0x6 LB: > { %s1050_s18 = sadd.s32 4294967295, %s1454_s17   ;;  %p78_p0 = scmp.ne.s32.totalorder %s1438_s13, %s1434_s12  ;;  %s1454_s17 = sphi %s1493_s17, %s18_s17   ;;  %s1450_s16 = sphi %s1491_s16, %s1950_s16   ;;  %s1446_s15 = sphi %s1489_s15, %s1949_s15   ;;  %s1442_s14 = sphi %s1487_s14, %s1948_s14   ;;  %s1438_s13 = sphi %s1485_s13, %s1947_s13   ;;  %s1434_s12 = sphi %s1483_s12, %s1946_s12  }
   0x7   : > { %p1515_p1 = scmp.eq.s32.totalorder %s1050_s18, 0  ;;  %p1051_p2 = scmp.ge.s32.totalorder %s1454_s17, 1 }
   0x8   : > { %p136_p3 = scmp.lt.s32.totalorder %s1454_s17, 4  ;;  %s1456_s22 = smov [#allocation7]  }
   0x9   : > { %s1937_s19 = scalar_select %p1515_p1, 1, 0 }
   0xa   : > { %p1523_p4 = por %p1515_p1, %p78_p0  ;;  %p1527_p5 = pnand %p1051_p2, %p136_p3 }
   0xb   : > { %s155_s23 = sshll.u32 %s1456_s22, 4  ;;  %s27_s25 = sadd.s32 1, %s1450_s16  ;;  %s156_s23 = int_to_ptr.vmem [resolvable:$true] %s155_s23 }
   0xc   : > { %s1938_s20 = scalar_select %p1523_p4, 1, 0 }
   0xd   : > { %s1939_s21 = scalar_select %p1527_p5, 1, 0 }
   0xe   : > { %p1131_p6 = pneg %p1527_p5  ;;  %s1312_s28 = scalar_lea.hbm %s1931_s2, 4096 }
   0xf   : > { %p1313_p8 = scmp.ne.s32.totalorder %s1931_s2, %s1312_s28  ;;  %p1319_p12 = scmp.lt.u32.totalorder %s1312_s28, %s1931_s2 }
  0x10   : > { %p1535_p7 = pnand %p1131_p6, %p1515_p1 }
  0x12   : > { %p1314_p9 = pneg %p1535_p7 }
  0x14   : > { %p1315_p10 = pnand %p1314_p9, %p1313_p8 }
  0x16   : > { %p1316_p11 = pneg %p1315_p10 }
  0x18   : > { %p1321_p13 = pnand %p1319_p12, %p1316_p11 }
  0x1a   : > { %1324 = shalt.err (!%p1321_p13)
}
  0x1b   : > { %s1325_s6 = scalar_lea.vmem %s156_s23, 4096  ;;  %p1333_p6 = scmp.lt.s32.totalorder %s156_s23, %s156_s23 }
  0x1c   : > { %p1326_p0 = scmp.ne.s32.totalorder %s156_s23, %s1325_s6  ;;  %p1334_p1 = scmp.lt.s32.totalorder %s1325_s6, %s1325_s6 }
  0x1e   : > { %p1328_p2 = pnand %p1326_p0, %p1314_p9  ;;  %p1335_p4 = por %p1334_p1, %p1333_p6 }
  0x20   : > { %p1329_p3 = pneg %p1328_p2 }
  0x22   : > { %p1336_p5 = pnand %p1335_p4, %p1329_p3 }
  0x24   : > { %1339 = shalt.err (!%p1336_p5)
}
  0x25   : > { %s1457_s7 = smov 256   ;;  %s1458_s8 = smov 16  }
  0x26   : > { %1134 = dma.hbm_to_vmem [thread:$0]  (!%p1535_p7), %s1931_s2, 4096, %s156_s23, [#allocation8], %s1457_s7, %s1457_s7, %s1458_s8  }
  0x27   : > { %p28_p1 = scmp.ge.s32.totalorder %s27_s25, 3  ;;  %s65_s11 = sadd.s32 1, %s1442_s14 }
  0x28   : > { %p72_p4 = scmp.ne.s32.totalorder %s1442_s14, %s1438_s13  ;;  %p73_p5 = scmp.eq.s32.totalorder %s1454_s17, 0 }
  0x29   : > { %s1952_s25 = smov (%p28_p1, %s27_s25), 0  ;;  %p1140_p9 = scmp.lt.s32.totalorder %s1454_s17, 3 }
  0x2a   : > { %p74_p8 = por %p73_p5, %p72_p4  ;;  %s61_s12 = ssub.s32 %s1450_s16, %s1952_s25 }
  0x2b   : > { %s169_s22 = sand.u32 1, %s1442_s14   ;;  %p63_p10 = scmp.eq.s32.totalorder %s61_s12, 0 }
  0x2c   : > { %s1055_s24 = sshll.u32 %s169_s22, 6  ;;  %s1120_s26 = sshll.u32 %s1450_s16, 10 }
  0x2d   : > { %s1571_s27 = scalar_select %p63_p10, %s1442_s14, %s65_s11  }
  0x2e   : > { %s1576_s23 = scalar_lea.hbm %s1930_s1, %s1120_s26  ;;  %s173_s30 = scalar_lea.vmem [#allocation4], %s1055_s24 }
  0x2f   : > { %s183_s4 = sshll.u32 %s173_s30, 4  ;;  %p1578_p7 = pnand %p1140_p9, %p74_p8  ;;  %s1582_s4 = int_to_ptr.vmem [resolvable:$true] %s183_s4 }
  0x30   : > { %s1584_s6 = scalar_lea.sflag [#allocation5], %s169_s22  ;;  %s1340_s9 = scalar_lea.hbm %s1576_s23, 1024 }
  0x31   : > { %p1341_p11 = scmp.ne.s32.totalorder %s1576_s23, %s1340_s9  ;;  %p1342_p12 = pneg %p1578_p7 }
  0x32   : > { %s1345_s12 = scalar_lea.hbm %s1930_s1, 3072  ;;  %p1346_p2 = scmp.lt.u32.totalorder %s1576_s23, %s1930_s1 }
  0x33   : > { %p1343_p13 = pnand %p1342_p12, %p1341_p11  ;;  %p1347_p3 = scmp.lt.u32.totalorder %s1345_s12, %s1340_s9 }
  0x34   : > { %p1349_p1 = scmp.lt.u32.totalorder %s1340_s9, %s1576_s23 }
  0x35   : > { %p1344_p0 = pneg %p1343_p13  ;;  %p1348_p6 = por %p1347_p3, %p1346_p2 }
  0x37   : > { %p1350_p4 = por %p1349_p1, %p1348_p6 }
  0x39   : > { %p1351_p5 = pnand %p1350_p4, %p1344_p0 }
  0x3b   : > { %1354 = shalt.err (!%p1351_p5)
}
  0x3c   : > { %s1355_s22 = scalar_lea.vmem %s1582_s4, 1024  ;;  %s1459_s28 = smov [#allocation4]  }
  0x3d   : > { %p1356_p8 = scmp.ne.s32.totalorder %s1582_s4, %s1355_s22  ;;  %s1360_s29 = sshll.u32 %s1459_s28, 4  ;;  %s1361_s29 = int_to_ptr.vmem [resolvable:$false] %s1360_s29 }
  0x3e   : > { %s1362_s30 = scalar_lea.vmem %s1361_s29, 2048  ;;  %p1363_p11 = scmp.lt.s32.totalorder %s1582_s4, %s1361_s29 }
  0x3f   : > { %p1358_p9 = pnand %p1356_p8, %p1342_p12  ;;  %p1364_p13 = scmp.lt.s32.totalorder %s1362_s30, %s1355_s22 }
  0x41   : > { %p1359_p10 = pneg %p1358_p9  ;;  %p1365_p2 = por %p1364_p13, %p1363_p11 }
  0x43   : > { %p1366_p3 = pnand %p1365_p2, %p1359_p10 }
  0x45   : > { %1369 = shalt.err (!%p1366_p3)
}
  0x46   : > { %1138 = dma.hbm_to_vmem [thread:$0]  (!%p1578_p7), %s1576_s23, 1024, %s1582_s4, %s1584_s6, %s1457_s7, %s1457_s7, %s1458_s8  }
  0x47   : > { %p1942_p12 = scmp.ne.s32.totalorder %s1939_s21, 0 }
  0x48   : > { %s197_s9 = sand.u32 (!%p1942_p12), 1, %s1438_s13   ;;  %p1943_p0 = scmp.ne.s32.totalorder (!%p1942_p12), %s1938_s20, 0 }
  0x49   : > { %195 = sbr.rel (%p1942_p12) target bundleno = 1195 (0x4ab), region = 32  ;;  %s1060_s10 = sshll.u32 (!%p1942_p12), %s197_s9, 6 }
  0x4a   : > { %s198_s11 = scalar_lea.sflag (!%p1942_p12), [#allocation5], %s197_s9  ;;  %s1618_s12 = scalar_lea.vmem (!%p1942_p12), [#allocation4], %s1060_s10 }
  0x50   : > { %1421 = dma.done.wait (%p1943_p0), %s198_s11, 1024  }
  0x51   : > { %1423 = vsyncadd (%p1943_p0), %s198_s11, 4294966272  ;;  %p1944_p6 = scmp.ne.s32.totalorder %s1937_s19, 0 }
  0x53   : > { %1425 = dma.done.wait (%p1944_p6), [#allocation8], 4096  }
  0x54   : > { %1427 = vsyncadd (%p1944_p6), [#allocation8], 4294963200  ;;  %p1062_p7 = scmp.ne.s32.totalorder %s1446_s15, 0 }
  0x55   : > { %v1460_v0 = vmov (!%p1062_p7), 0.0  }
  0x56   : > { %236 = sbr.rel (%p1062_p7) target bundleno = 93 (0x5d), region = 44  ;;  %237 = vst [vmem:[#allocation2] sm:$0xff] (!%p1062_p7), %v1460_v0  ;;  %238 = vst [vmem:[#allocation3] sm:$0xff] (!%p1062_p7), %v1460_v0 }
  0x5d PF: > { %v1629_v1 = vld [vmem:[#allocation7 + $0x4] ss:$16 sps:$4 sm:$0xff]   ;;  %v1631_v2 = vld [vmem:[#allocation7] ss:$16 sps:$4 sm:$0xff]   ;;  %v1461_v3 = vmov 0   ;;  %s1687_s19 = sshll.u32 %s1446_s15, 2 }
  0x5e   : > { %474 = vmatprep.mubr.bf16.mxu0 %v1461_v3  ;;  %515 = vmatprep.mubr.bf16.mxu1 %v1461_v3  ;;  %v1636_v4 = vld [vmem:[#allocation7 + $0x24] ss:$16 sps:$4 sm:$0xff]   ;;  %v1640_v5 = vld [vmem:[#allocation7 + $0x20] ss:$16 sps:$4 sm:$0xff]   ;;  %v1646_v7 = vld [vmem:[#allocation7 + $0xc] ss:$16 sps:$4 sm:$0xff]   ;;  %v552_v24 = vstv %s1687_s19 }
  0x5f   : > { %442 = vmatprep.subr.bf16.mxu0 %v1629_v1  ;;  %1198 = vset.pattern.permute.xlu0 %v1461_v3  ;;  %v1644_v6 = vld [vmem:[#allocation7 + $0x44] ss:$16 sps:$4 sm:$0xff]   ;;  %v1648_v8 = vld [vmem:[#allocation7 + $0x8] ss:$16 sps:$4 sm:$0xff]   ;;  %v1651_v9 = vld [vmem:[#allocation7 + $0x40] ss:$16 sps:$4 sm:$0xff]  }
  0x60   : > { %443 = vmatpush1.bf16.msra.mxu0 %v1631_v2  ;;  %1199 = vset.pattern.permute.xlu1 %v1461_v3  ;;  %v1655_v10 = vld [vmem:[#allocation7 + $0x64] ss:$16 sps:$4 sm:$0xff]   ;;  %v1658_v11 = vld [vmem:[#allocation7 + $0x2c] ss:$16 sps:$4 sm:$0xff]   ;;  %v1660_v12 = vld [vmem:[#allocation7 + $0x28] ss:$16 sps:$4 sm:$0xff]  }
  0x61   : > { %444 = vmatprep.subr.bf16.mxu0 %v1636_v4  ;;  %483 = vmatprep.subr.bf16.mxu1 %v1646_v7  ;;  %v1664_v13 = vld [vmem:[#allocation7 + $0x60] ss:$16 sps:$4 sm:$0xff]   ;;  %v1666_v14 = vld [vmem:[#allocation7 + $0x84] ss:$16 sps:$4 sm:$0xff]   ;;  %v1668_v15 = vld [vmem:[#allocation7 + $0x4c] ss:$16 sps:$4 sm:$0xff]  }
  0x62   : > { %484 = vmatpush1.bf16.msra.mxu1 %v1648_v8  ;;  %v1672_v16 = vld [vmem:[#allocation7 + $0x48] ss:$16 sps:$4 sm:$0xff]   ;;  %v1675_v17 = vld [vmem:[#allocation7 + $0x6c] ss:$16 sps:$4 sm:$0xff]   ;;  %v1678_v18 = vld [vmem:[#allocation7 + $0x80] ss:$16 sps:$4 sm:$0xff]  }
  0x63   : > { %485 = vmatprep.subr.bf16.mxu1 %v1658_v11  ;;  %v1681_v19 = vld [vmem:[#allocation7 + $0xa4] ss:$16 sps:$4 sm:$0xff]   ;;  %v1684_v20 = vld [vmem:[#allocation7 + $0x68] ss:$16 sps:$4 sm:$0xff]   ;;  %v1690_v21 = vld [vmem:[#allocation7 + $0x8c] ss:$16 sps:$4 sm:$0xff]  }
  0x64   : > { %445 = vmatpush1.bf16.msra.mxu0 %v1640_v5  ;;  %s679_s20 = sadd.s32 1, %s1687_s19  ;;  %v1693_v22 = vld [vmem:[#allocation7 + $0xa0] ss:$16 sps:$4 sm:$0xff]   ;;  %v1696_v23 = vld [vmem:[#allocation7 + $0xc4] ss:$16 sps:$4 sm:$0xff]   ;;  %v1709_v28 = vld [vmem:[%s1929_s0] sm:$0xff] }
  0x65   : > { %446 = vmatprep.subr.bf16.mxu0 %v1644_v6  ;;  %v1701_v25 = vld [vmem:[#allocation7 + $0x88] ss:$16 sps:$4 sm:$0xff]   ;;  %v680_v26 = vstv %s679_s20  ;;  %v1704_v27 = vld [vmem:[#allocation7 + $0xac] ss:$16 sps:$4 sm:$0xff]   ;;  %vm553_vm0 = vcmp.lt.s32.totalorder %v552_v24, %v1709_v28  ;;  %v1713_v29 = vld [vmem:[#allocation7 + $0xc0] ss:$16 sps:$4 sm:$0xff]  }
  0x66   : > { %486 = vmatpush1.bf16.msra.mxu1 %v1660_v12  ;;  %v554_v30 = vsel %vm553_vm0, 1, %v1461_v3  ;;  %vm681_vm1 = vcmp.lt.s32.totalorder %v680_v26, %v1709_v28  ;;  %v1718_v31 = vld [vmem:[#allocation7 + $0xe4] ss:$16 sps:$4 sm:$0xff]   ;;  %v1721_v32 = vld [vmem:[#allocation7 + $0xa8] ss:$16 sps:$4 sm:$0xff]   ;;  %s807_s8 = sadd.s32 2, %s1687_s19 }
  0x67   : > { %487 = vmatprep.subr.bf16.mxu1 %v1668_v15  ;;  %v1724_v33 = vld [vmem:[#allocation7 + $0xcc] ss:$16 sps:$4 sm:$0xff]   ;;  %556 = vperm.xlu0 %1198, %v554_v30   ;;  %v682_v34 = vsel %vm681_vm1, 1, %v1461_v3  ;;  %v1728_v35 = vld [vmem:[#allocation7 + $0xe0] ss:$16 sps:$4 sm:$0xff]   ;;  %s935_s23 = sadd.s32 3, %s1687_s19 }
  0x68   : > { %447 = vmatpush1.bf16.msra.mxu0 %v1651_v9  ;;  %v1730_v36 = vld [vmem:[#allocation2] sm:$0xff]  ;;  %v1734_v37 = vld [vmem:[#allocation7 + $0xc8] ss:$16 sps:$4 sm:$0xff]   ;;  %v1737_v38 = vld [vmem:[#allocation7 + $0xec] ss:$16 sps:$4 sm:$0xff]   ;;  %p1114_p1 = scmp.ne.s32.totalorder %s1446_s15, 2 }
  0x69   : > { %448 = vmatprep.subr.bf16.mxu0 %v1655_v10  ;;  %v281_v39 = vpack.c.bf16 %v1730_v36, %v1730_v36  ;;  %v1743_v40 = vld [vmem:[#allocation7 + $0xe8] ss:$16 sps:$4 sm:$0xff]   ;;  %v275_v41 = vld [vmem:[%s1618_s12] sm:$0xff] }
  0x6a   : > { %488 = vmatpush1.bf16.msra.mxu1 %v1672_v16  ;;  %v277_v42 = vunpack.c.l.bf16 %v275_v41  ;;  %v278_v43 = vunpack.c.h.bf16 %v275_v41  ;;  %v276_v45 = vld [vmem:[%s1618_s12 + $0x8] sm:$0xff] }
  0x6b   : > { %489 = vmatprep.subr.bf16.mxu1 %v1675_v17  ;;  %684 = vperm.xlu0 %1198, %v682_v34   ;;  %v280_v52 = vunpack.c.h.bf16 %v276_v45  ;;  %v279_v58 = vunpack.c.l.bf16 %v276_v45  ;;  %v274_v34 = vld [vmem:[#allocation3] sm:$0xff] }
  0x6c   : > { %449 = vmatpush1.bf16.msra.mxu0 %v1664_v13 }
  0x6d   : > { %450 = vmatprep.subr.bf16.mxu0 %v1666_v14 }
  0x6e   : > { %490 = vmatpush1.bf16.msra.mxu1 %v1684_v20 }
  0x6f   : > { %491 = vmatprep.subr.bf16.mxu1 %v1690_v21 }
  0x70   : > { %451 = vmatpush1.bf16.msra.mxu0 %v1678_v18 }
  0x71   : > { %452 = vmatprep.subr.bf16.mxu0 %v1681_v19 }
  0x72   : > { %492 = vmatpush1.bf16.msra.mxu1 %v1701_v25 }
  0x73   : > { %493 = vmatprep.subr.bf16.mxu1 %v1704_v27 }
  0x74   : > { %453 = vmatpush1.bf16.msra.mxu0 %v1693_v22 }
  0x75   : > { %454 = vmatprep.subr.bf16.mxu0 %v1696_v23 }
  0x76   : > { %494 = vmatpush1.bf16.msra.mxu1 %v1721_v32 }
  0x77   : > { %495 = vmatprep.subr.bf16.mxu1 %v1724_v33 }
  0x78   : > { %455 = vmatpush1.bf16.msra.mxu0 %v1713_v29 }
  0x79   : > { %456 = vmatprep.subr.bf16.mxu0 %v1718_v31 }
  0x7a   : > { %496 = vmatpush1.bf16.msra.mxu1 %v1734_v37 }
  0x7b   : > { %497 = vmatprep.subr.bf16.mxu1 %v1737_v38 }
  0x7c   : > { %457 = vmatpush1.bf16.msra.mxu0 %v1728_v35 }
  0x7d   : > { %569 = vmatprep.subr.bf16.mxu0 %v1629_v1 }
  0x7e   : > { %498 = vmatpush1.bf16.msra.mxu1 %v1743_v40 }
  0x7f   : > { %475 = vmatmul.mubr.bf16.vlgmr.msra.gmra.mrb[0].mxu0 %v281_v39  ;;  %610 = vmatprep.subr.bf16.mxu1 %v1646_v7 }
  0x80   : > { %570 = vmatpush1.bf16.msra.mxu0 %v1631_v2  ;;  %601 = vmatprep.mubr.bf16.mxu0 %v1461_v3 }
  0x81   : > { %571 = vmatprep.subr.bf16.mxu0 %v1636_v4  ;;  %516 = vmatmul.mubr.bf16.vlgmr.msra.gmra.mrb[0].mxu1 %v281_v39 }
  0x82   : > { %611 = vmatpush1.bf16.msra.mxu1 %v1648_v8  ;;  %642 = vmatprep.mubr.bf16.mxu1 %v1461_v3 }
  0x83   : > { %612 = vmatprep.subr.bf16.mxu1 %v1658_v11 }
  0x84   : > { %572 = vmatpush1.bf16.msra.mxu0 %v1640_v5 }
  0x85   : > { %573 = vmatprep.subr.bf16.mxu0 %v1644_v6 }
  0x86   : > { %613 = vmatpush1.bf16.msra.mxu1 %v1660_v12 }
  0x87   : > { %614 = vmatprep.subr.bf16.mxu1 %v1668_v15 }
  0x88   : > { %574 = vmatpush1.bf16.msra.mxu0 %v1651_v9 }
  0x89   : > { %575 = vmatprep.subr.bf16.mxu0 %v1655_v10 }
  0x8a   : > { %615 = vmatpush1.bf16.msra.mxu1 %v1672_v16 }
  0x8b   : > { %616 = vmatprep.subr.bf16.mxu1 %v1675_v17 }
  0x8c   : > { %576 = vmatpush1.bf16.msra.mxu0 %v1664_v13 }
  0x8d   : > { %577 = vmatprep.subr.bf16.mxu0 %v1666_v14 }
  0x8e   : > { %617 = vmatpush1.bf16.msra.mxu1 %v1684_v20 }
  0x8f   : > { %618 = vmatprep.subr.bf16.mxu1 %v1690_v21 }
  0x90   : > { %578 = vmatpush1.bf16.msra.mxu0 %v1678_v18 }
  0x91   : > { %579 = vmatprep.subr.bf16.mxu0 %v1681_v19 }
  0x92   : > { %619 = vmatpush1.bf16.msra.mxu1 %v1701_v25 }
  0x93   : > { %620 = vmatprep.subr.bf16.mxu1 %v1704_v27 }
  0x94   : > { %580 = vmatpush1.bf16.msra.mxu0 %v1693_v22 }
  0x95   : > { %581 = vmatprep.subr.bf16.mxu0 %v1696_v23 }
  0x96   : > { %621 = vmatpush1.bf16.msra.mxu1 %v1721_v32 }
  0x97   : > { %622 = vmatprep.subr.bf16.mxu1 %v1724_v33 }
  0x98   : > { %582 = vmatpush1.bf16.msra.mxu0 %v1713_v29 }
  0x99   : > { %583 = vmatprep.subr.bf16.mxu0 %v1718_v31 }
  0x9a   : > { %623 = vmatpush1.bf16.msra.mxu1 %v1734_v37 }
  0x9b   : > { %624 = vmatprep.subr.bf16.mxu1 %v1737_v38 }
  0x9c   : > { %584 = vmatpush1.bf16.msra.mxu0 %v1728_v35 }
  0x9d   : > { %697 = vmatprep.subr.bf16.mxu0 %v1629_v1 }
  0x9e   : > { %625 = vmatpush1.bf16.msra.mxu1 %v1743_v40 }
  0x9f   : > { %738 = vmatprep.subr.bf16.mxu1 %v1646_v7 }
 0x152   : > { %v476_v44 = vpop.f32.mrb[0].mxu0 }
 0x153   : > { %v524_v46 = vadd.f32 %v476_v44, %v277_v42  ;;  %v478_v47 = vpop.f32.mrb[1].mxu0  ;;  %v557_v42 = vpop.permute.xlu0 %556 }
 0x154   : > { %v525_v48 = vadd.f32 %v478_v47, %v278_v43  ;;  %v480_v49 = vpop.f32.mrb[2].mxu0  ;;  %v517_v54 = vpop.f32.mrb[0].mxu1  ;;  %vm558_vm2 = vcmp.eq.s32.totalorder %v557_v42, 1 }
 0x155   : > { %v1096_v50 = vmul.f32 -1.442695, %v524_v46  ;;  %v481_v51 = vpop.f32.mrb[3].mxu0  ;;  %v519_v55 = vpop.f32.mrb[1].mxu1  ;;  %v526_v61 = vadd.f32 %v517_v54, %v279_v58 }
 0x156   : > { %v1097_v53 = vmul.f32 -1.442695, %v525_v48  ;;  %v527_v56 = vadd.f32 %v519_v55, %v280_v52  ;;  %v521_v57 = vpop.f32.mrb[2].mxu1 }
 0x157   : > { %1248 = vpow2.f32 %v1096_v50  ;;  %v522_v59 = vpop.f32.mrb[3].mxu1 }
 0x158   : > { %1250 = vpow2.f32 %v1097_v53  ;;  %v1098_v60 = vmul.f32 -1.442695, %v527_v56  ;;  %v936_v53 = vstv %s935_s23  ;;  %v1099_v56 = vld [vmem:[%s1618_s12 + $0x10] sm:$0xff] }
 0x159   : > { %vm937_vm4 = vcmp.lt.s32.totalorder %v936_v53, %v1709_v28  ;;  %v564_v57 = vunpack.c.l.bf16 %v1099_v56 }
 0x15a   : > { %1252 = vpow2.f32 %v1098_v60  ;;  %v938_v55 = vsel %vm937_vm4, 1, %v1461_v3  ;;  %v1100_v60 = vld [vmem:[%s1618_s12 + $0x18] sm:$0xff] }
 0x15b   : > { %1254 = vtanh.f32 %v526_v61  ;;  %v566_v42 = vunpack.c.l.bf16 %v1100_v60 }
 0x161   : > { %v1249_v62 = vpop.eup %1248 }
 0x162   : > { %v1251_v63 = vpop.eup %1250  ;;  %v531_v0 = vadd.f32 1.0, %v1249_v62 }
 0x163   : > { %v537_v24 = vadd.f32 1.0, %v1251_v63 }
 0x164   : > { %1256 = vrcp.f32 %v531_v0  ;;  %v1253_v26 = vpop.eup %1252 }
 0x165   : > { %1258 = vrcp.f32 %v537_v24  ;;  %v1255_v30 = vpop.eup %1254  ;;  %v544_v41 = vadd.f32 1.0, %v1253_v26 }
 0x167   : > { %1260 = vrcp.f32 %v544_v41 }
 0x16e   : > { %v1257_v39 = vpop.eup %1256 }
 0x16f   : > { %v1259_v43 = vpop.eup %1258  ;;  %v548_v44 = vmul.f32 %v1257_v39, %v1255_v30  ;;  %v567_v39 = vunpack.c.h.bf16 %v1100_v60 }
 0x170   : > { %v547_v45 = vmul.f32 %v1259_v43, %v274_v34 }
 0x171   : > { %v1261_v48 = vpop.eup %1260 }
 0x172   : > { %v549_v46 = vadd.f32 %v548_v44, %v547_v45 }
 0x174   : > { %1262 = vtanh.f32 %v549_v46  ;;  %v1785_v47 = vsel %vm558_vm2, %v549_v46, %v274_v34 }
 0x17e   : > { %v1263_v49 = vpop.eup %1262 }
 0x17f   : > { %v551_v50 = vmul.f32 %v1263_v49, %v1261_v48 }
 0x181   : > { %v1788_v51 = vsel %vm558_vm2, %v551_v50, %v1730_v36  ;;  %v808_v36 = vstv %s807_s8 }
 0x182   : > { %v568_v52 = vpack.c.bf16 %v1788_v51, %v1788_v51  ;;  %vm809_vm3 = vcmp.lt.s32.totalorder %v808_v36, %v1709_v28 }
 0x183   : > { %v810_v54 = vsel %vm809_vm3, 1, %v1461_v3 }
 0x184   : > { %602 = vmatmul.mubr.bf16.vlgmr.msra.gmra.mrb[4].mxu0 %v568_v52  ;;  %643 = vmatmul.mubr.bf16.vlgmr.msra.gmra.mrb[4].mxu1 %v568_v52 }
 0x185   : > { %698 = vmatpush1.bf16.msra.mxu0 %v1631_v2  ;;  %739 = vmatpush1.bf16.msra.mxu1 %v1648_v8 }
 0x186   : > { %699 = vmatprep.subr.bf16.mxu0 %v1636_v4  ;;  %740 = vmatprep.subr.bf16.mxu1 %v1658_v11 }
 0x187   : > { %729 = vmatprep.mubr.bf16.mxu0 %v1461_v3  ;;  %770 = vmatprep.mubr.bf16.mxu1 %v1461_v3 }
 0x188   : > { %812 = vperm.xlu1 %1199, %v810_v54  }
 0x189   : > { %700 = vmatpush1.bf16.msra.mxu0 %v1640_v5  ;;  %741 = vmatpush1.bf16.msra.mxu1 %v1660_v12 }
 0x18a   : > { %701 = vmatprep.subr.bf16.mxu0 %v1644_v6  ;;  %742 = vmatprep.subr.bf16.mxu1 %v1668_v15 }
 0x18c   : > { %940 = vperm.xlu1 %1199, %v938_v55  }
 0x18d   : > { %702 = vmatpush1.bf16.msra.mxu0 %v1651_v9  ;;  %743 = vmatpush1.bf16.msra.mxu1 %v1672_v16 }
 0x18e   : > { %703 = vmatprep.subr.bf16.mxu0 %v1655_v10  ;;  %744 = vmatprep.subr.bf16.mxu1 %v1675_v17 }
 0x191   : > { %704 = vmatpush1.bf16.msra.mxu0 %v1664_v13  ;;  %745 = vmatpush1.bf16.msra.mxu1 %v1684_v20 }
 0x192   : > { %705 = vmatprep.subr.bf16.mxu0 %v1666_v14  ;;  %746 = vmatprep.subr.bf16.mxu1 %v1690_v21 }
 0x195   : > { %706 = vmatpush1.bf16.msra.mxu0 %v1678_v18  ;;  %747 = vmatpush1.bf16.msra.mxu1 %v1701_v25 }
 0x196   : > { %707 = vmatprep.subr.bf16.mxu0 %v1681_v19  ;;  %748 = vmatprep.subr.bf16.mxu1 %v1704_v27 }
 0x199   : > { %708 = vmatpush1.bf16.msra.mxu0 %v1693_v22  ;;  %749 = vmatpush1.bf16.msra.mxu1 %v1721_v32 }
 0x19a   : > { %709 = vmatprep.subr.bf16.mxu0 %v1696_v23  ;;  %750 = vmatprep.subr.bf16.mxu1 %v1724_v33 }
 0x19d   : > { %710 = vmatpush1.bf16.msra.mxu0 %v1713_v29  ;;  %751 = vmatpush1.bf16.msra.mxu1 %v1734_v37 }
 0x19e   : > { %711 = vmatprep.subr.bf16.mxu0 %v1718_v31  ;;  %752 = vmatprep.subr.bf16.mxu1 %v1737_v38 }
 0x1a1   : > { %712 = vmatpush1.bf16.msra.mxu0 %v1728_v35  ;;  %753 = vmatpush1.bf16.msra.mxu1 %v1743_v40 }
 0x1a2   : > { %825 = vmatprep.subr.bf16.mxu0 %v1629_v1  ;;  %866 = vmatprep.subr.bf16.mxu1 %v1646_v7  ;;  %v565_v1 = vunpack.c.h.bf16 %v1099_v56  ;;  %v685_v56 = vpop.permute.xlu0 %684 }
 0x1a3   : > { %vm686_vm5 = vcmp.eq.s32.totalorder %v685_v56, 1 }
 0x257   : > { %v603_v58 = vpop.f32.mrb[4].mxu0  ;;  %v644_v7 = vpop.f32.mrb[4].mxu1 }
 0x258   : > { %v651_v59 = vadd.f32 %v603_v58, %v564_v57  ;;  %v605_v61 = vpop.f32.mrb[5].mxu0  ;;  %v646_v62 = vpop.f32.mrb[5].mxu1  ;;  %v653_v44 = vadd.f32 %v644_v7, %v566_v42 }
 0x259   : > { %v652_v63 = vadd.f32 %v605_v61, %v565_v1  ;;  %v607_v0 = vpop.f32.mrb[6].mxu0  ;;  %v648_v24 = vpop.f32.mrb[6].mxu1  ;;  %v654_v41 = vadd.f32 %v646_v62, %v567_v39  ;;  %v1109_v39 = vld [vmem:[%s1618_s12 + $0x30] sm:$0xff] }
 0x25a   : > { %v1101_v26 = vmul.f32 -1.442695, %v651_v59  ;;  %v608_v28 = vpop.f32.mrb[7].mxu0  ;;  %v649_v30 = vpop.f32.mrb[7].mxu1  ;;  %v821_v42 = vunpack.c.h.bf16 %v1109_v39 }
 0x25b   : > { %v1102_v34 = vmul.f32 -1.442695, %v652_v63  ;;  %v1103_v43 = vmul.f32 -1.442695, %v654_v41  ;;  %v820_v41 = vunpack.c.l.bf16 %v1109_v39 }
 0x25c   : > { %1264 = vpow2.f32 %v1101_v26 }
 0x25d   : > { %1266 = vpow2.f32 %v1102_v34 }
 0x25e   : > { %1268 = vpow2.f32 %v1103_v43 }
 0x25f   : > { %1270 = vtanh.f32 %v653_v44 }
 0x266   : > { %v1265_v45 = vpop.eup %1264 }
 0x267   : > { %v1267_v46 = vpop.eup %1266  ;;  %v658_v48 = vadd.f32 1.0, %v1265_v45 }
 0x268   : > { %v664_v49 = vadd.f32 1.0, %v1267_v46  ;;  %v1269_v50 = vpop.eup %1268  ;;  %v1110_v46 = vld [vmem:[%s1618_s12 + $0x38] sm:$0xff] }
 0x269   : > { %1272 = vrcp.f32 %v658_v48  ;;  %v1271_v52 = vpop.eup %1270  ;;  %v671_v55 = vadd.f32 1.0, %v1269_v50 }
 0x26a   : > { %1274 = vrcp.f32 %v664_v49 }
 0x26b   : > { %1276 = vrcp.f32 %v671_v55 }
 0x273   : > { %v1273_v36 = vpop.eup %1272 }
 0x274   : > { %v1275_v53 = vpop.eup %1274  ;;  %v675_v54 = vmul.f32 %v1273_v36, %v1271_v52 }
 0x275   : > { %v674_v57 = vmul.f32 %v1275_v53, %v1785_v47  ;;  %v1277_v7 = vpop.eup %1276 }
 0x277   : > { %v676_v1 = vadd.f32 %v675_v54, %v674_v57  ;;  %v823_v57 = vunpack.c.h.bf16 %v1110_v46 }
 0x279   : > { %1278 = vtanh.f32 %v676_v1  ;;  %v1836_v58 = vsel %vm686_vm5, %v676_v1, %v1785_v47 }
 0x283   : > { %v1279_v59 = vpop.eup %1278 }
 0x284   : > { %v678_v60 = vmul.f32 %v1279_v59, %v1277_v7 }
 0x286   : > { %v1839_v61 = vsel %vm686_vm5, %v678_v60, %v1788_v51 }
 0x287   : > { %v696_v62 = vpack.c.bf16 %v1839_v61, %v1839_v61 }
 0x289   : > { %730 = vmatmul.mubr.bf16.vlgmr.msra.gmra.mrb[8].mxu0 %v696_v62  ;;  %771 = vmatmul.mubr.bf16.vlgmr.msra.gmra.mrb[8].mxu1 %v696_v62 }
 0x28a   : > { %826 = vmatpush1.bf16.msra.mxu0 %v1631_v2  ;;  %867 = vmatpush1.bf16.msra.mxu1 %v1648_v8  ;;  %v1104_v2 = vld [vmem:[%s1618_s12 + $0x20] sm:$0xff] }
 0x28b   : > { %827 = vmatprep.subr.bf16.mxu0 %v1636_v4  ;;  %868 = vmatprep.subr.bf16.mxu1 %v1658_v11  ;;  %v693_v4 = vunpack.c.h.bf16 %v1104_v2 }
 0x28c   : > { %857 = vmatprep.mubr.bf16.mxu0 %v1461_v3  ;;  %898 = vmatprep.mubr.bf16.mxu1 %v1461_v3  ;;  %v692_v3 = vunpack.c.l.bf16 %v1104_v2 }
 0x28e   : > { %828 = vmatpush1.bf16.msra.mxu0 %v1640_v5  ;;  %869 = vmatpush1.bf16.msra.mxu1 %v1660_v12 }
 0x28f   : > { %829 = vmatprep.subr.bf16.mxu0 %v1644_v6  ;;  %870 = vmatprep.subr.bf16.mxu1 %v1668_v15 }
 0x292   : > { %830 = vmatpush1.bf16.msra.mxu0 %v1651_v9  ;;  %871 = vmatpush1.bf16.msra.mxu1 %v1672_v16  ;;  %v1105_v9 = vld [vmem:[%s1618_s12 + $0x28] sm:$0xff] }
 0x293   : > { %831 = vmatprep.subr.bf16.mxu0 %v1655_v10  ;;  %872 = vmatprep.subr.bf16.mxu1 %v1675_v17 }
 0x296   : > { %832 = vmatpush1.bf16.msra.mxu0 %v1664_v13  ;;  %873 = vmatpush1.bf16.msra.mxu1 %v1684_v20 }
 0x297   : > { %833 = vmatprep.subr.bf16.mxu0 %v1666_v14  ;;  %874 = vmatprep.subr.bf16.mxu1 %v1690_v21  ;;  %v694_v21 = vunpack.c.l.bf16 %v1105_v9 }
 0x29a   : > { %834 = vmatpush1.bf16.msra.mxu0 %v1678_v18  ;;  %875 = vmatpush1.bf16.msra.mxu1 %v1701_v25 }
 0x29b   : > { %835 = vmatprep.subr.bf16.mxu0 %v1681_v19  ;;  %876 = vmatprep.subr.bf16.mxu1 %v1704_v27  ;;  %v695_v19 = vunpack.c.h.bf16 %v1105_v9 }
 0x29e   : > { %836 = vmatpush1.bf16.msra.mxu0 %v1693_v22  ;;  %877 = vmatpush1.bf16.msra.mxu1 %v1721_v32 }
 0x29f   : > { %837 = vmatprep.subr.bf16.mxu0 %v1696_v23  ;;  %878 = vmatprep.subr.bf16.mxu1 %v1724_v33 }
 0x2a2   : > { %838 = vmatpush1.bf16.msra.mxu0 %v1713_v29  ;;  %879 = vmatpush1.bf16.msra.mxu1 %v1734_v37  ;;  %v813_v37 = vpop.permute.xlu1 %812 }
 0x2a3   : > { %839 = vmatprep.subr.bf16.mxu0 %v1718_v31  ;;  %880 = vmatprep.subr.bf16.mxu1 %v1737_v38  ;;  %vm814_vm6 = vcmp.eq.s32.totalorder %v813_v37, 1 }
 0x2a6   : > { %840 = vmatpush1.bf16.msra.mxu0 %v1728_v35  ;;  %881 = vmatpush1.bf16.msra.mxu1 %v1743_v40 }
 0x35c   : > { %v731_v5 = vpop.f32.mrb[8].mxu0  ;;  %v772_v6 = vpop.f32.mrb[8].mxu1 }
 0x35d   : > { %v779_v8 = vadd.f32 %v731_v5, %v692_v3  ;;  %v733_v10 = vpop.f32.mrb[9].mxu0  ;;  %v774_v11 = vpop.f32.mrb[9].mxu1  ;;  %v781_v23 = vadd.f32 %v772_v6, %v694_v21 }
 0x35e   : > { %v780_v12 = vadd.f32 %v733_v10, %v693_v4  ;;  %v735_v13 = vpop.f32.mrb[10].mxu0  ;;  %v776_v14 = vpop.f32.mrb[10].mxu1  ;;  %v782_v20 = vadd.f32 %v774_v11, %v695_v19 }
 0x35f   : > { %v1106_v15 = vmul.f32 -1.442695, %v779_v8  ;;  %v736_v16 = vpop.f32.mrb[11].mxu0  ;;  %v777_v17 = vpop.f32.mrb[11].mxu1 }
 0x360   : > { %v1107_v18 = vmul.f32 -1.442695, %v780_v12  ;;  %v1108_v22 = vmul.f32 -1.442695, %v782_v20  ;;  %v941_v10 = vpop.permute.xlu1 %940 }
 0x361   : > { %1280 = vpow2.f32 %v1106_v15  ;;  %vm942_vm7 = vcmp.eq.s32.totalorder %v941_v10, 1 }
 0x362   : > { %1282 = vpow2.f32 %v1107_v18 }
 0x363   : > { %1284 = vpow2.f32 %v1108_v22 }
 0x364   : > { %1286 = vtanh.f32 %v781_v23 }
 0x36b   : > { %v1281_v25 = vpop.eup %1280 }
 0x36c   : > { %v1283_v27 = vpop.eup %1282  ;;  %v786_v29 = vadd.f32 1.0, %v1281_v25 }
 0x36d   : > { %v792_v31 = vadd.f32 1.0, %v1283_v27  ;;  %v1285_v32 = vpop.eup %1284 }
 0x36e   : > { %1288 = vrcp.f32 %v786_v29  ;;  %v1287_v33 = vpop.eup %1286  ;;  %v799_v40 = vadd.f32 1.0, %v1285_v32 }
 0x36f   : > { %1290 = vrcp.f32 %v792_v31 }
 0x370   : > { %1292 = vrcp.f32 %v799_v40 }
 0x378   : > { %v1289_v35 = vpop.eup %1288 }
 0x379   : > { %v1291_v38 = vpop.eup %1290  ;;  %v803_v47 = vmul.f32 %v1289_v35, %v1287_v33 }
 0x37a   : > { %v802_v51 = vmul.f32 %v1291_v38, %v1836_v58  ;;  %v1293_v24 = vpop.eup %1292 }
 0x37c   : > { %v804_v63 = vadd.f32 %v803_v47, %v802_v51 }
 0x37e   : > { %1294 = vtanh.f32 %v804_v63  ;;  %v816_v0 = vsel %vm814_vm6, %v804_v63, %v1836_v58  ;;  %v822_v58 = vunpack.c.l.bf16 %v1110_v46 }
 0x388   : > { %v1295_v26 = vpop.eup %1294 }
 0x389   : > { %v806_v28 = vmul.f32 %v1295_v26, %v1293_v24 }
 0x38b   : > { %v815_v30 = vsel %vm814_vm6, %v806_v28, %v1839_v61 }
 0x38c   : > { %v824_v34 = vpack.c.bf16 %v815_v30, %v815_v30 }
 0x38e   : > { %858 = vmatmul.mubr.bf16.vlgmr.msra.gmra.mrb[12].mxu0 %v824_v34  ;;  %899 = vmatmul.mubr.bf16.vlgmr.msra.gmra.mrb[12].mxu1 %v824_v34 }
 0x461   : > { %v859_v43 = vpop.f32.mrb[12].mxu0  ;;  %v900_v44 = vpop.f32.mrb[12].mxu1 }
 0x462   : > { %v907_v45 = vadd.f32 %v859_v43, %v820_v41  ;;  %v861_v48 = vpop.f32.mrb[13].mxu0  ;;  %v902_v49 = vpop.f32.mrb[13].mxu1  ;;  %v909_v59 = vadd.f32 %v900_v44, %v822_v58 }
 0x463   : > { %v908_v50 = vadd.f32 %v861_v48, %v821_v42  ;;  %v863_v52 = vpop.f32.mrb[14].mxu0  ;;  %v904_v36 = vpop.f32.mrb[14].mxu1  ;;  %v910_v1 = vadd.f32 %v902_v49, %v823_v57 }
 0x464   : > { %v1111_v53 = vmul.f32 -1.442695, %v907_v45  ;;  %v864_v54 = vpop.f32.mrb[15].mxu0  ;;  %v905_v55 = vpop.f32.mrb[15].mxu1 }
 0x465   : > { %v1112_v56 = vmul.f32 -1.442695, %v908_v50  ;;  %v1113_v7 = vmul.f32 -1.442695, %v910_v1 }
 0x466   : > { %1296 = vpow2.f32 %v1111_v53 }
 0x467   : > { %1298 = vpow2.f32 %v1112_v56 }
 0x468   : > { %1300 = vpow2.f32 %v1113_v7 }
 0x469   : > { %1302 = vtanh.f32 %v909_v59 }
 0x470   : > { %v1297_v60 = vpop.eup %1296 }
 0x471   : > { %v1299_v61 = vpop.eup %1298  ;;  %v914_v62 = vadd.f32 1.0, %v1297_v60 }
 0x472   : > { %v920_v2 = vadd.f32 1.0, %v1299_v61  ;;  %v1301_v3 = vpop.eup %1300 }
 0x473   : > { %1304 = vrcp.f32 %v914_v62  ;;  %v1303_v4 = vpop.eup %1302  ;;  %v927_v9 = vadd.f32 1.0, %v1301_v3 }
 0x474   : > { %1306 = vrcp.f32 %v920_v2 }
 0x475   : > { %1308 = vrcp.f32 %v927_v9 }
 0x47d   : > { %v1305_v5 = vpop.eup %1304 }
 0x47e   : > { %v1307_v6 = vpop.eup %1306  ;;  %v931_v8 = vmul.f32 %v1305_v5, %v1303_v4 }
 0x47f   : > { %v930_v11 = vmul.f32 %v1307_v6, %v816_v0  ;;  %v1309_v14 = vpop.eup %1308 }
 0x481   : > { %v932_v12 = vadd.f32 %v931_v8, %v930_v11 }
 0x483   : > { %1310 = vtanh.f32 %v932_v12  ;;  %v944_v13 = vsel %vm942_vm7, %v932_v12, %v816_v0 }
 0x484   : > { %946 = vst [vmem:[#allocation3] sm:$0xff] %v944_v13 }
 0x48b   : > { %950 = sbr.rel (%p1114_p1) target bundleno = 1170 (0x492), region = 48 }
 0x48d   : > { %v1311_v15 = vpop.eup %1310 }
 0x48e   : > { %v934_v16 = vmul.f32 %v1311_v15, %v1309_v14 }
 0x490   : > { %v943_v17 = vsel %vm942_vm7, %v934_v16, %v815_v30 }
 0x491   : > { %945 = vst [vmem:[#allocation2] sm:$0xff] %v943_v17  ;;  %951 = vst [vmem:[#allocation9] sm:$0xff] (!%p1114_p1), %v943_v17 }
 0x492 PF: > { %p1885_p4 = scmp.eq.s32.totalorder %s1050_s18, 2  ;;  %s1462_s5 = smov [#allocation9]  }
 0x493   : > { %s961_s6 = sshll.u32 %s1462_s5, 4  ;;  %s962_s6 = int_to_ptr.vmem [resolvable:$true] %s961_s6 }
 0x494   : > { %s1370_s24 = scalar_lea.vmem %s962_s6, 128  ;;  %p1377_p10 = scmp.lt.s32.totalorder %s962_s6, %s962_s6 }
 0x495   : > { %p1371_p5 = scmp.ne.s32.totalorder %s962_s6, %s1370_s24  ;;  %p1378_p11 = scmp.lt.s32.totalorder %s1370_s24, %s1370_s24 }
 0x497   : > { %p1372_p8 = pnand %p1371_p5, %p1885_p4  ;;  %p1379_p13 = por %p1378_p11, %p1377_p10 }
 0x499   : > { %p1373_p9 = pneg %p1372_p8 }
 0x49b   : > { %p1380_p2 = pnand %p1379_p13, %p1373_p9 }
 0x49d   : > { %1383 = shalt.err (!%p1380_p2)
}
 0x49e   : > { %s1384_s18 = scalar_lea.hbm %s1932_s3, 128 }
 0x49f   : > { %p1385_p3 = scmp.ne.s32.totalorder %s1932_s3, %s1384_s18  ;;  %p1390_p6 = scmp.lt.u32.totalorder %s1384_s18, %s1932_s3 }
 0x4a1   : > { %p1386_p12 = pnand %p1385_p3, %p1885_p4 }
 0x4a3   : > { %p1387_p0 = pneg %p1386_p12 }
 0x4a5   : > { %p1392_p7 = pnand %p1390_p6, %p1387_p0 }
 0x4a7   : > { %1395 = shalt.err (!%p1392_p7)
}
 0x4a8   : > { %1128 = dma.vmem_to_hbm [thread:$0]  (%p1885_p4), %s962_s6, 128, %s1932_s3, [#allocation6]  }
 0x4a9   : > { %1429 = dma.done.wait (%p1885_p4), [#allocation6], 128  }
 0x4aa   : > { %1431 = vsyncadd (%p1885_p4), [#allocation6], 4294967168 }
 0x4ab PF: > { %s18_s17 = sadd.s32 1, %s1454_s17   ;;  %s1946_s12 = smov %s1438_s13 }
 0x4ac   : > { %p15_p1 = scmp.ge.s32.totalorder %s18_s17, 5   ;;  %s1947_s13 = smov %s1442_s14 }
 0x4ad   : > { %s1948_s14 = smov %s1571_s27  ;;  %s1949_s15 = smov %s1450_s16 }
 0x4ae   : > { %s1950_s16 = smov %s1952_s25  ;;  %17 = sbr.rel (!%p15_p1) target bundleno = 6 (0x6), region = 88 }
 0x4b5   :  { %974 = vsyncpa [#allocation5], 1 }
 0x4b6   :  { %976 = vsyncpa [#allocation5 + $0x1], 1 }
 0x4b7   :  { %977 = vsyncpa [#allocation8], 1 }
 0x4b8   :  { %978 = vsyncpa [#allocation6], 1 }
 0x4b9   :  { %980 = vsyncpa [#allocation6 + $0x1], 1 }

</bundles_post_ra>
